<compile_context>
chip_gen: v7x
topology: tpu7x:2x2x1
jax: 0.10.0
libtpu: 0.0.40
codegen_flags: <defaults>
</compile_context>

<pallas_src>
import functools

import jax
import jax.numpy as jnp
from jax.experimental import pallas as pl
from jax.experimental.pallas import tpu as pltpu

EPS = 1e-5      # torch.nn.BatchNorm1d default
_LANE = 128
_SUB = 8


def cbn_kernel(x_ref, gb_ref, o_ref,
               sum_ref, ssq_ref, a_ref, b_ref, cache_ref=None,
               *, inv_n, cache_x):
    """grid = (n_f, 2, n_t); axis 1 is the phase axis (0 = stats, 1 = apply)."""
    p = pl.program_id(1)
    t = pl.program_id(2)
    batch = x_ref.shape[0]

    # ---- phase 0, first T-block: zero the per-f-block partial accumulators ----
    @pl.when((p == 0) & (t == 0))
    def _init():
        sum_ref[...] = jnp.zeros_like(sum_ref)
        ssq_ref[...] = jnp.zeros_like(ssq_ref)

    # ---- phase 0: accumulate (f_blk, t_blk) partial sums --------------------
    @pl.when(p == 0)
    def _stats():
        # Loop over B so only (f_blk, t_blk) f32 temporaries are ever live (the
        # full (B, f_blk, t_blk) upcast never materializes); the cross-lane
        # reductions are deferred to the fold step (2 XLU reduces per f-block
        # instead of 2 per T-block).
        def body(b, carry):
            s, q = carry
            xb = x_ref[b].astype(jnp.float32)          # (f_blk, t_blk)
            return s + xb, q + xb * xb

        zero = jnp.zeros(sum_ref.shape, jnp.float32)
        s, q = jax.lax.fori_loop(0, batch, body, (zero, zero), unroll=True)
        sum_ref[...] += s
        ssq_ref[...] += q
        if cache_x:
            cache_ref[t] = x_ref[...]   # stash block: apply pass reads VMEM, not HBM

    # ---- phase 1, first T-block: fold stats + gamma/beta into scale/shift ----
    @pl.when((p == 1) & (t == 0))
    def _fold():
        total = jnp.sum(sum_ref[...], axis=-1, keepdims=True)        # (f_blk, 1)
        total_sq = jnp.sum(ssq_ref[...], axis=-1, keepdims=True)     # (f_blk, 1)
        mean = total * inv_n
        # Biased variance (training-mode BN normalizer), accumulated in f32;
        # clamp guards the E[x^2]-E[x]^2 cancellation when |mean| >> std.
        var = jnp.maximum(total_sq * inv_n - mean * mean, 0.0)
        inv_std = jax.lax.rsqrt(var + EPS)                            # (f_blk, 1)

        gamma = gb_ref[0]                                             # (B, f_blk, 1)
        beta = gb_ref[1]                                              # (B, f_blk, 1)
        a = gamma * inv_std[None]                                     # (B, f_blk, 1)
        a_ref[...] = a
        b_ref[...] = beta - a * mean[None]

    # ---- phase 1: one fused FMA pass per (B, f_blk, t_blk) block -------------
    @pl.when(p == 1)
    def _apply():
        xb = cache_ref[t] if cache_x else x_ref[...]
        o_ref[...] = (xb * a_ref[...] + b_ref[...]).astype(o_ref.dtype)


def _vmem_capacity_bytes():
    try:
        return int(pltpu.get_tpu_info().vmem_capacity_bytes)
    except Exception:
        return 64 * 1024 * 1024   # assume the tightest generation (v7x) if unknown


def _step_vmem_bytes(B, T, f_blk, t_blk, itemsize, cache):
    """Honest per-step VMEM estimate: double-buffered blocks, lane-padded
    scratch, f32 temporaries and (optionally) the cached x slab."""
    blk = B * f_blk * t_blk
    total = 0
    total += 2 * blk * itemsize                 # x block (double-buffered)
    total += 2 * blk * itemsize                 # out block (double-buffered)
    total += 2 * 2 * B * f_blk * _LANE * 4      # gamma|beta block, lane-padded, x2 buf
    total += 2 * f_blk * t_blk * 4              # sum / ssq f32 accumulators
    total += 2 * B * f_blk * _LANE * 4          # a / b scratch ((B,f_blk,1) lane-padded)
    if cache:
        total += pl.cdiv(T, t_blk) * blk * itemsize   # cached x slab (B, f_blk, T)
    total += 4 * f_blk * t_blk * 4              # phase-0 f32 temporaries (per-b)
    total += 2 * blk * 4                        # phase-1 f32 FMA temporaries
    return total


def _pick_blocks(B, F, T, itemsize, budget):
    """Pick (f_blk, t_blk, cache): lane-dense T blocks, sublane-aligned F blocks
    that divide the dims, n_F >= 2 when F allows, largest tiles under budget."""
    f_all = [f for f in range(_SUB, F + 1, _SUB) if F % f == 0] or [F]
    # prefer >= 2 F-blocks so both v7x TensorCores get work on the parallel axis
    f_pref = [f for f in f_all if f <= F // 2] or f_all
    t_all = [t for t in range(_LANE, min(T, 8192) + 1, _LANE) if T % t == 0] or [T]

    def search(cache):
        for t_blk in sorted(t_all, reverse=True):        # lane-dense tiles first
            for f_blk in sorted(f_pref, reverse=True):
                if _step_vmem_bytes(B, T, f_blk, t_blk, itemsize, cache) <= budget:
                    return f_blk, t_blk
        return None

    got = search(cache=True)            # single HBM read of x when the slab fits
    if got is not None:
        return got[0], got[1], True
    got = search(cache=False)           # fall back to two-pass HBM streaming
    if got is not None:
        return got[0], got[1], False
    return min(f_pref), min(t_all), False


def cbatchnorm1d_legacy(x, c, wg, bg, wb, bb, *, f_blk=None, t_blk=None, cache=None):
    """x: (B, F, T); c: (B, C); wg/wb: (F, C) PyTorch nn.Linear weights;
    bg/bb: (F,) biases. Returns (B, F, T)."""
    B, F, T = x.shape
    itemsize = jnp.dtype(x.dtype).itemsize
    f32 = jnp.float32

    cap = _vmem_capacity_bytes()
    vmem_limit = min(int(cap * 0.75), 100 * 1024 * 1024)
    budget = max(vmem_limit - 8 * 1024 * 1024, 8 * 1024 * 1024)

    auto_f, auto_t, auto_cache = _pick_blocks(B, F, T, itemsize, budget)
    f_blk = auto_f if f_blk is None else f_blk
    t_blk = auto_t if t_blk is None else t_blk
    if cache is None:
        cache = _step_vmem_bytes(B, T, f_blk, t_blk, itemsize, True) <= budget

    assert F % f_blk == 0 and T % t_blk == 0, "block sizes must divide F / T"
    assert f_blk == F or f_blk % _SUB == 0, "f_blk must be a multiple of 8 (or F)"
    assert t_blk == T or t_blk % _LANE == 0, "t_blk must be a multiple of 128 (or T)"
    n_f, n_t = F // f_blk, T // t_blk

    # Glue: the tiny gamma/beta linears (B,C)x(C,F) badly under-fill the MXU and
    # would need 4 lane-sparse DMAs + a concat per f-block in-kernel, so they
    # are hoisted to XLA; the kernel receives the folded (2, B, F, 1) result.
    gamma = c.astype(f32) @ wg.astype(f32).T + bg.astype(f32)    # (B, F)
    beta = c.astype(f32) @ wb.astype(f32).T + bb.astype(f32)     # (B, F)
    gb = jnp.stack([gamma, beta], axis=0)[..., None]             # (2, B, F, 1)

    if cache:
        # phase 1 parks x on the last-fetched block -> no second HBM read of x.
        x_map = lambda f, p, t: (0, f, t * (1 - p) + (n_t - 1) * p)
    else:
        x_map = lambda f, p, t: (0, f, t)

    kernel = functools.partial(cbn_kernel, inv_n=1.0 / float(B * T), cache_x=cache)

    scratch = [
        pltpu.VMEM((f_blk, t_blk), f32),      # partial sum(x)   per (channel, lane)
        pltpu.VMEM((f_blk, t_blk), f32),      # partial sum(x^2) per (channel, lane)
        pltpu.VMEM((B, f_blk, 1), f32),       # a = gamma * inv_std
        pltpu.VMEM((B, f_blk, 1), f32),       # b = beta - a * mean
    ]
    if cache:
        scratch.append(pltpu.VMEM((n_t, B, f_blk, t_blk), x.dtype))   # x slab

    reads = 2 if cache else 3
    cost = pl.CostEstimate(
        flops=int(5 * B * F * T + 8 * F),
        transcendentals=int(F),
        bytes_accessed=int(reads * B * F * T * itemsize + 2 * B * F * 4),
    )

    grid_spec = pltpu.PrefetchScalarGridSpec(
        num_scalar_prefetch=0,
        grid=(n_f, 2, n_t),
        in_specs=[
            pl.BlockSpec((B, f_blk, t_blk), x_map),                        # x
            pl.BlockSpec((2, B, f_blk, 1), lambda f, p, t: (0, 0, f, 0)),  # gamma|beta
        ],
        # Output parks on T-block 0 through the stats phase (its block index is
        # unchanged, so nothing is flushed) and streams lane-dense blocks in
        # the apply phase.
        out_specs=pl.BlockSpec((B, f_blk, t_blk), lambda f, p, t: (0, f, t * p)),
        scratch_shapes=scratch,
    )

    return pl.pallas_call(
        kernel,
        out_shape=jax.ShapeDtypeStruct((B, F, T), x.dtype),
        grid_spec=grid_spec,
        compiler_params=pltpu.CompilerParams(
            dimension_semantics=("parallel", "arbitrary", "arbitrary"),
            vmem_limit_bytes=int(vmem_limit)),
        cost_estimate=cost,
    )(x, gb)


def reference(x, c, wg, bg, wb, bb):
    gamma = c @ wg.T + bg          # (B, F)
    beta = c @ wb.T + bb           # (B, F)
    mean = jnp.mean(x, axis=(0, 2), keepdims=True)
    var = jnp.mean((x - mean) ** 2, axis=(0, 2), keepdims=True)
    net = (x - mean) / jnp.sqrt(var + EPS)
    return gamma[:, :, None] * net + beta[:, :, None]


if __name__ == "__main__":
    B, C_DIM, F_DIM, T = 2, 8, 16, 256

    key = jax.random.PRNGKey(0)
    kx, kc, k1, k2, k3, k4 = jax.random.split(key, 6)

    x = jax.random.normal(kx, (B, F_DIM, T), dtype=jnp.float32)
    c = jax.random.normal(kc, (B, C_DIM), dtype=jnp.float32)

    # fc_gamma / fc_beta params (nn.Linear(c_dim, f_dim): weight (F, C), bias (F,)).
    # reset_parameters() zeros the weights (gamma bias=1, beta bias=0); add a
    # small deterministic perturbation so the linear path is actually exercised.
    wg = 0.05 * jax.random.normal(k1, (F_DIM, C_DIM), dtype=jnp.float32)
    bg = 1.0 + 0.05 * jax.random.normal(k2, (F_DIM,), dtype=jnp.float32)
    wb = 0.05 * jax.random.normal(k3, (F_DIM, C_DIM), dtype=jnp.float32)
    bb = 0.05 * jax.random.normal(k4, (F_DIM,), dtype=jnp.float32)

    ref = reference(x, c, wg, bg, wb, bb)

    # auto blocks: f_blk=8 -> 2 "parallel" F-blocks, x cached in VMEM (1 HBM read)
    out_auto = jax.block_until_ready(cbatchnorm1d_legacy(x, c, wg, bg, wb, bb))
    # explicit small T blocks -> grid (2, 2, 2): exercises T streaming + VMEM cache
    out_tiled = jax.block_until_ready(
        cbatchnorm1d_legacy(x, c, wg, bg, wb, bb, f_blk=8, t_blk=128))
    # forced two-pass (no VMEM cache): exercises the large-slab fallback path
    out_nocache = jax.block_until_ready(
        cbatchnorm1d_legacy(x, c, wg, bg, wb, bb, f_blk=8, t_blk=128, cache=False))

    assert out_auto.shape == (B, F_DIM, T)
    assert jnp.allclose(out_auto, ref, atol=1e-4, rtol=1e-4), "auto-block mismatch"
    assert jnp.allclose(out_tiled, ref, atol=1e-4, rtol=1e-4), "tiled mismatch"
    assert jnp.allclose(out_nocache, ref, atol=1e-4, rtol=1e-4), "no-cache mismatch"

    print("KERNEL_OK")
</pallas_src>

<mosaic_0001>
module attributes {stable_mosaic.version = 11 : i64} {
  func.func @cbn_kernel(%arg0: i32, %arg1: i32, %arg2: i32, %arg3: memref<2x8x256xf32, #tpu.memory_space<vmem>>, %arg4: memref<2x2x8x1xf32, #tpu.memory_space<vmem>>, %arg5: memref<2x8x256xf32, #tpu.memory_space<vmem>>, %arg6: memref<8x256xf32, #tpu.memory_space<vmem>>, %arg7: memref<8x256xf32, #tpu.memory_space<vmem>>, %arg8: memref<2x8x1xf32, #tpu.memory_space<vmem>>, %arg9: memref<2x8x1xf32, #tpu.memory_space<vmem>>, %arg10: memref<1x2x8x256xf32, #tpu.memory_space<vmem>>) attributes {dimension_semantics = [#tpu.dimension_semantics<parallel>, #tpu.dimension_semantics<arbitrary>, #tpu.dimension_semantics<arbitrary>], iteration_bounds = array<i64: 2, 2, 1>, scalar_prefetch = 0 : i64, scratch_operands = 5 : i64, tpu.core_type = #tpu.core_type<tc>, window_params = [{transform_indices = @transform_0, window_bounds = array<i64: 2, 8, 256>}, {transform_indices = @transform_1, window_bounds = array<i64: 2, 2, 8, 1>}, {transform_indices = @transform_2, window_bounds = array<i64: 2, 8, 256>}]} {
    %c0_i32 = arith.constant 0 : i32
    %0 = arith.cmpi eq, %arg1, %c0_i32 : i32
    %c0_i32_0 = arith.constant 0 : i32
    %1 = arith.cmpi eq, %arg2, %c0_i32_0 : i32
    %2 = arith.andi %0, %1 : i1
    %3 = arith.extui %2 : i1 to i32
    %c0_i32_1 = arith.constant 0 : i32
    %4 = arith.cmpi ne, %3, %c0_i32_1 : i32
    scf.if %4 {
      %cst = arith.constant 0.000000e+00 : f32
      %16 = vector.broadcast %cst : f32 to vector<8x256xf32>
      %c0 = arith.constant 0 : index
      %c0_8 = arith.constant 0 : index
      %17 = vector.load %arg6[%c0, %c0_8] : memref<8x256xf32, #tpu.memory_space<vmem>>, vector<8x256xf32>
      tpu.vector_store %arg6[%c0, %c0_8], %16 {strides = array<i32>} : memref<8x256xf32, #tpu.memory_space<vmem>>, vector<8x256xf32>,
      %cst_9 = arith.constant 0.000000e+00 : f32
      %18 = vector.broadcast %cst_9 : f32 to vector<8x256xf32>
      %c0_10 = arith.constant 0 : index
      %c0_11 = arith.constant 0 : index
      %19 = vector.load %arg7[%c0_10, %c0_11] : memref<8x256xf32, #tpu.memory_space<vmem>>, vector<8x256xf32>
      tpu.vector_store %arg7[%c0_10, %c0_11], %18 {strides = array<i32>} : memref<8x256xf32, #tpu.memory_space<vmem>>, vector<8x256xf32>,
    } else {
    }
    %c0_i32_2 = arith.constant 0 : i32
    %5 = arith.cmpi eq, %arg1, %c0_i32_2 : i32
    %6 = arith.extui %5 : i1 to i32
    %c0_i32_3 = arith.constant 0 : i32
    %7 = arith.cmpi ne, %6, %c0_i32_3 : i32
    scf.if %7 {
      %cst = arith.constant 0.000000e+00 : f32
      %16 = vector.broadcast %cst : f32 to vector<8x256xf32>
      %c0_i32_8 = arith.constant 0 : i32
      %17 = arith.index_cast %c0_i32_8 : i32 to index
      %c0 = arith.constant 0 : index
      %c0_9 = arith.constant 0 : index
      %18 = vector.load %arg3[%17, %c0, %c0_9] : memref<2x8x256xf32, #tpu.memory_space<vmem>>, vector<1x8x256xf32>
      %19 = vector.shape_cast %18 : vector<1x8x256xf32> to vector<8x256xf32>
      %20 = arith.addf %16, %19 : vector<8x256xf32>
      %21 = arith.mulf %19, %19 : vector<8x256xf32>
      %22 = arith.addf %16, %21 : vector<8x256xf32>
      %c1_i32_10 = arith.constant 1 : i32
      %23 = arith.index_cast %c1_i32_10 : i32 to index
      %c0_11 = arith.constant 0 : index
      %c0_12 = arith.constant 0 : index
      %24 = vector.load %arg3[%23, %c0_11, %c0_12] : memref<2x8x256xf32, #tpu.memory_space<vmem>>, vector<1x8x256xf32>
      %25 = vector.shape_cast %24 : vector<1x8x256xf32> to vector<8x256xf32>
      %26 = arith.addf %20, %25 : vector<8x256xf32>
      %27 = arith.mulf %25, %25 : vector<8x256xf32>
      %28 = arith.addf %22, %27 : vector<8x256xf32>
      %c2_i32 = arith.constant 2 : i32
      %c0_13 = arith.constant 0 : index
      %c0_14 = arith.constant 0 : index
      %29 = vector.load %arg6[%c0_13, %c0_14] : memref<8x256xf32, #tpu.memory_space<vmem>>, vector<8x256xf32>
      %30 = arith.addf %29, %26 : vector<8x256xf32>
      %c0_15 = arith.constant 0 : index
      %c0_16 = arith.constant 0 : index
      %31 = vector.load %arg6[%c0_15, %c0_16] : memref<8x256xf32, #tpu.memory_space<vmem>>, vector<8x256xf32>
      tpu.vector_store %arg6[%c0_15, %c0_16], %30 {strides = array<i32>} : memref<8x256xf32, #tpu.memory_space<vmem>>, vector<8x256xf32>,
      %c0_17 = arith.constant 0 : index
      %c0_18 = arith.constant 0 : index
      %32 = vector.load %arg7[%c0_17, %c0_18] : memref<8x256xf32, #tpu.memory_space<vmem>>, vector<8x256xf32>
      %33 = arith.addf %32, %28 : vector<8x256xf32>
      %c0_19 = arith.constant 0 : index
      %c0_20 = arith.constant 0 : index
      %34 = vector.load %arg7[%c0_19, %c0_20] : memref<8x256xf32, #tpu.memory_space<vmem>>, vector<8x256xf32>
      tpu.vector_store %arg7[%c0_19, %c0_20], %33 {strides = array<i32>} : memref<8x256xf32, #tpu.memory_space<vmem>>, vector<8x256xf32>,
      %c0_21 = arith.constant 0 : index
      %c0_22 = arith.constant 0 : index
      %c0_23 = arith.constant 0 : index
      %35 = vector.load %arg3[%c0_21, %c0_22, %c0_23] : memref<2x8x256xf32, #tpu.memory_space<vmem>>, vector<2x8x256xf32>
      %36 = arith.index_cast %arg2 : i32 to index
      %c0_24 = arith.constant 0 : index
      %c0_25 = arith.constant 0 : index
      %c0_26 = arith.constant 0 : index
      %37 = vector.load %arg10[%36, %c0_24, %c0_25, %c0_26] : memref<1x2x8x256xf32, #tpu.memory_space<vmem>>, vector<1x2x8x256xf32>
      %38 = vector.shape_cast %37 : vector<1x2x8x256xf32> to vector<2x8x256xf32>
      %39 = vector.shape_cast %35 : vector<2x8x256xf32> to vector<1x2x8x256xf32>
      tpu.vector_store %arg10[%36, %c0_24, %c0_25, %c0_26], %39 {strides = array<i32>} : memref<1x2x8x256xf32, #tpu.memory_space<vmem>>, vector<1x2x8x256xf32>,
    } else {
    }
    %c1_i32 = arith.constant 1 : i32
    %8 = arith.cmpi eq, %arg1, %c1_i32 : i32
    %c0_i32_4 = arith.constant 0 : i32
    %9 = arith.cmpi eq, %arg2, %c0_i32_4 : i32
    %10 = arith.andi %8, %9 : i1
    %11 = arith.extui %10 : i1 to i32
    %c0_i32_5 = arith.constant 0 : i32
    %12 = arith.cmpi ne, %11, %c0_i32_5 : i32
    scf.if %12 {
      %c0 = arith.constant 0 : index
      %c0_8 = arith.constant 0 : index
      %16 = vector.load %arg6[%c0, %c0_8] : memref<8x256xf32, #tpu.memory_space<vmem>>, vector<8x256xf32>
      %cst = arith.constant dense<0.000000e+00> : vector<8xf32>
      %17 = vector.multi_reduction <add>, %16, %cst [1] : vector<8x256xf32> to vector<8xf32>
      %18 = vector.shape_cast %17 : vector<8xf32> to vector<8x1xf32>
      %c0_9 = arith.constant 0 : index
      %c0_10 = arith.constant 0 : index
      %19 = vector.load %arg7[%c0_9, %c0_10] : memref<8x256xf32, #tpu.memory_space<vmem>>, vector<8x256xf32>
      %cst_11 = arith.constant dense<0.000000e+00> : vector<8xf32>
      %20 = vector.multi_reduction <add>, %19, %cst_11 [1] : vector<8x256xf32> to vector<8xf32>
      %21 = vector.shape_cast %20 : vector<8xf32> to vector<8x1xf32>
      %cst_12 = arith.constant 0.001953125 : f32
      %22 = vector.broadcast %cst_12 : f32 to vector<8x1xf32>
      %23 = arith.mulf %18, %22 : vector<8x1xf32>
      %cst_13 = arith.constant 0.001953125 : f32
      %24 = vector.broadcast %cst_13 : f32 to vector<8x1xf32>
      %25 = arith.mulf %21, %24 : vector<8x1xf32>
      %26 = arith.mulf %23, %23 : vector<8x1xf32>
      %27 = arith.subf %25, %26 : vector<8x1xf32>
      %cst_14 = arith.constant 0.000000e+00 : f32
      %28 = vector.broadcast %cst_14 : f32 to vector<8x1xf32>
      %29 = arith.maximumf %27, %28 : vector<8x1xf32>
      %cst_15 = arith.constant 9.99999974E-6 : f32
      %30 = vector.broadcast %cst_15 : f32 to vector<8x1xf32>
      %31 = arith.addf %29, %30 : vector<8x1xf32>
      %32 = math.rsqrt %31 : vector<8x1xf32>
      %c0_16 = arith.constant 0 : index
      %c0_17 = arith.constant 0 : index
      %c0_18 = arith.constant 0 : index
      %c0_19 = arith.constant 0 : index
      %33 = vector.load %arg4[%c0_16, %c0_17, %c0_18, %c0_19] : memref<2x2x8x1xf32, #tpu.memory_space<vmem>>, vector<1x2x8x1xf32>
      %34 = vector.shape_cast %33 : vector<1x2x8x1xf32> to vector<2x8x1xf32>
      %c1 = arith.constant 1 : index
      %c0_20 = arith.constant 0 : index
      %c0_21 = arith.constant 0 : index
      %c0_22 = arith.constant 0 : index
      %35 = vector.load %arg4[%c1, %c0_20, %c0_21, %c0_22] : memref<2x2x8x1xf32, #tpu.memory_space<vmem>>, vector<1x2x8x1xf32>
      %36 = vector.shape_cast %35 : vector<1x2x8x1xf32> to vector<2x8x1xf32>
      %37 = vector.shape_cast %32 : vector<8x1xf32> to vector<1x8x1xf32>
      %38 = vector.broadcast %37 : vector<1x8x1xf32> to vector<2x8x1xf32>
      %39 = arith.mulf %34, %38 : vector<2x8x1xf32>
      %c0_23 = arith.constant 0 : index
      %c0_24 = arith.constant 0 : index
      %c0_25 = arith.constant 0 : index
      %40 = vector.load %arg8[%c0_23, %c0_24, %c0_25] : memref<2x8x1xf32, #tpu.memory_space<vmem>>, vector<2x8x1xf32>
      tpu.vector_store %arg8[%c0_23, %c0_24, %c0_25], %39 {strides = array<i32>} : memref<2x8x1xf32, #tpu.memory_space<vmem>>, vector<2x8x1xf32>,
      %41 = vector.shape_cast %23 : vector<8x1xf32> to vector<1x8x1xf32>
      %42 = vector.broadcast %41 : vector<1x8x1xf32> to vector<2x8x1xf32>
      %43 = arith.mulf %39, %42 : vector<2x8x1xf32>
      %44 = arith.subf %36, %43 : vector<2x8x1xf32>
      %c0_26 = arith.constant 0 : index
      %c0_27 = arith.constant 0 : index
      %c0_28 = arith.constant 0 : index
      %45 = vector.load %arg9[%c0_26, %c0_27, %c0_28] : memref<2x8x1xf32, #tpu.memory_space<vmem>>, vector<2x8x1xf32>
      tpu.vector_store %arg9[%c0_26, %c0_27, %c0_28], %44 {strides = array<i32>} : memref<2x8x1xf32, #tpu.memory_space<vmem>>, vector<2x8x1xf32>,
    } else {
    }
    %c1_i32_6 = arith.constant 1 : i32
    %13 = arith.cmpi eq, %arg1, %c1_i32_6 : i32
    %14 = arith.extui %13 : i1 to i32
    %c0_i32_7 = arith.constant 0 : i32
    %15 = arith.cmpi ne, %14, %c0_i32_7 : i32
    scf.if %15 {
      %16 = arith.index_cast %arg2 : i32 to index
      %c0 = arith.constant 0 : index
      %c0_8 = arith.constant 0 : index
      %c0_9 = arith.constant 0 : index
      %17 = vector.load %arg10[%16, %c0, %c0_8, %c0_9] : memref<1x2x8x256xf32, #tpu.memory_space<vmem>>, vector<1x2x8x256xf32>
      %18 = vector.shape_cast %17 : vector<1x2x8x256xf32> to vector<2x8x256xf32>
      %c0_10 = arith.constant 0 : index
      %c0_11 = arith.constant 0 : index
      %c0_12 = arith.constant 0 : index
      %19 = vector.load %arg8[%c0_10, %c0_11, %c0_12] : memref<2x8x1xf32, #tpu.memory_space<vmem>>, vector<2x8x1xf32>
      %20 = vector.broadcast %19 : vector<2x8x1xf32> to vector<2x8x256xf32>
      %21 = arith.mulf %18, %20 : vector<2x8x256xf32>
      %c0_13 = arith.constant 0 : index
      %c0_14 = arith.constant 0 : index
      %c0_15 = arith.constant 0 : index
      %22 = vector.load %arg9[%c0_13, %c0_14, %c0_15] : memref<2x8x1xf32, #tpu.memory_space<vmem>>, vector<2x8x1xf32>
      %23 = vector.broadcast %22 : vector<2x8x1xf32> to vector<2x8x256xf32>
      %24 = arith.addf %21, %23 : vector<2x8x256xf32>
      %c0_16 = arith.constant 0 : index
      %c0_17 = arith.constant 0 : index
      %c0_18 = arith.constant 0 : index
      %25 = vector.load %arg5[%c0_16, %c0_17, %c0_18] : memref<2x8x256xf32, #tpu.memory_space<vmem>>, vector<2x8x256xf32>
      tpu.vector_store %arg5[%c0_16, %c0_17, %c0_18], %24 {strides = array<i32>} : memref<2x8x256xf32, #tpu.memory_space<vmem>>, vector<2x8x256xf32>,
    } else {
    }
    return
  }
  func.func @transform_0(%arg0: i32, %arg1: i32, %arg2: i32) -> (i32, i32, i32) {
    %c1_i32 = arith.constant 1 : i32
    %0 = arith.subi %c1_i32, %arg1 : i32
    %1 = arith.muli %arg2, %0 : i32
    %c0_i32 = arith.constant 0 : i32
    %2 = arith.muli %c0_i32, %arg1 : i32
    %3 = arith.addi %1, %2 : i32
    %c0_i32_0 = arith.constant 0 : i32
    %c0_i32_1 = arith.constant 0 : i32
    return %c0_i32_0, %arg0, %3 : i32, i32, i32
  }
  func.func @transform_1(%arg0: i32, %arg1: i32, %arg2: i32) -> (i32, i32, i32, i32) {
    %c0_i32 = arith.constant 0 : i32
    %c0_i32_0 = arith.constant 0 : i32
    %c0_i32_1 = arith.constant 0 : i32
    %c0_i32_2 = arith.constant 0 : i32
    return %c0_i32, %c0_i32_0, %arg0, %c0_i32_1 : i32, i32, i32, i32
  }
  func.func @transform_2(%arg0: i32, %arg1: i32, %arg2: i32) -> (i32, i32, i32) {
    %0 = arith.muli %arg2, %arg1 : i32
    %c0_i32 = arith.constant 0 : i32
    %c0_i32_0 = arith.constant 0 : i32
    return %c0_i32, %arg0, %0 : i32, i32, i32
  }
}

</mosaic_0001>

<bundles_post_ra>
// kernel: tpu_custom_call.1
= control target key start
LH: loop header
LB: loop body
LE: loop exit
PB: predicated region body
PF: predicated region fallthrough
CT: control target
= control target key end

     0   :  { %7 = vsyncpa [#allocation10], 0  ;;  %s934_s0 = inlined_call_operand.vmem [shape: f32[2,16,256], index: 0, kind: input, shape index: {}]   ;;  %s935_s1 = inlined_call_operand.vmem [shape: f32[2,2,16,1], index: 1, kind: input, shape index: {}]   ;;  %s936_s2 = inlined_call_operand.hbm [shape: f32[2,16,256], index: 2, kind: output, shape index: {}]  }
   0x1   :  { %9 = vsyncpa [#allocation10 + $0x1], 0  ;;  %s763_s9 = smov 0   ;;  %s765_s10 = smov 0  }
   0x2   :  { %s767_s11 = smov 0   ;;  %s769_s12 = smov 0  }
   0x3   :  { %s771_s13 = smov 0   ;;  %s773_s14 = smov 0  }
   0x4   :  { %s775_s15 = smov 0   ;;  %s777_s16 = smov 0  }
   0x5 LB: > { %s536_s17 = sadd.s32 4294967295, %s740_s16   ;;  %s537_s18 = sadd.s32 4294967294, %s740_s16   ;;  %s740_s16 = sphi %s777_s16, %s15_s16   ;;  %s736_s15 = sphi %s775_s15, %s946_s15   ;;  %s732_s14 = sphi %s773_s14, %s945_s14   ;;  %s728_s13 = sphi %s771_s13, %s944_s13   ;;  %s724_s12 = sphi %s769_s12, %s943_s12   ;;  %s720_s11 = sphi %s767_s11, %s942_s11   ;;  %s716_s10 = sphi %s765_s10, %s941_s10   ;;  %s712_s9 = sphi %s763_s9, %s940_s9  }
   0x6   : > { %s30_s19 = sadd.s32 1, %s732_s14  ;;  %s34_s20 = sadd.s32 1, %s736_s15 }
   0x7   : > { %p32_p0 = scmp.ge.s32.totalorder %s30_s19, 2  ;;  %p54_p1 = scmp.ne.s32.totalorder %s720_s11, %s716_s10 }
   0x8   : > { %p55_p2 = scmp.eq.s32.totalorder %s740_s16, 0  ;;  %p114_p4 = scmp.eq.s32.totalorder %s536_s17, 3 }
   0x9   : > { %s948_s19 = smov (%p32_p0, %s30_s19), 0  ;;  %s950_s20 = smov (!%p32_p0, %s34_s20), %s736_s15 }
   0xa   : > { %p813_p3 = por %p55_p2, %p54_p1  ;;  %p36_p5 = scmp.ge.s32.totalorder %s950_s20, 2 }
   0xb   : > { %p119_p6 = scmp.ne.s32.totalorder %s716_s10, %s712_s9  ;;  %p819_p7 = por %p114_p4, %p54_p1 }
   0xc   : > { %p120_p8 = scmp.eq.s32.totalorder %s537_s18, 3  ;;  %s952_s20 = smov (%p36_p5, %s950_s20), 0 }
   0xd   : > { %s42_s24 = ssub.s32 %s736_s15, %s952_s20  ;;  %s47_s25 = sadd.s32 1, %s720_s11 }
   0xe   : > { %p825_p9 = por %p120_p8, %p119_p6  ;;  %p45_p10 = scmp.eq.s32.totalorder %s42_s24, 0 }
   0xf   : > { %p539_p11 = scmp.ge.s32.totalorder %s740_s16, 4 }
  0x10   : > { %s833_s26 = scalar_select %p45_p10, %s720_s11, %s47_s25  }
  0x11   : > { %136 = sbr.rel (%p539_p11) target bundleno = 38 (0x26), region = 16 }
  0x18   : > { %139 = sbr.rel (!%p813_p3) target bundleno = 31 (0x1f), region = 20  ;;  %s141_s27 = sand.u32 (%p813_p3), 1, %s720_s11  }
  0x19   : > { %s562_s28 = sshll.u32 (%p813_p3), %s736_s15, 4  ;;  %s540_s29 = sshll.u32 (%p813_p3), %s141_s27, 5 }
  0x1a   : > { %s150_s4 = scalar_lea.vmem (%p813_p3), %s934_s0, %s562_s28  ;;  %s143_s5 = scalar_lea.vmem (%p813_p3), [#allocation7], %s540_s29 }
  0x1b   : > { %v163_v0 = vld [vmem:[%s150_s4] sm:$0xff] (%p813_p3)  ;;  %v165_v1 = vld [vmem:[%s150_s4 + $0x8] sm:$0xff] (%p813_p3) }
  0x1c   : > { %v167_v2 = vld [vmem:[%s150_s4 + $0x20] sm:$0xff] (%p813_p3)  ;;  %164 = vst [vmem:[%s143_s5] sm:$0xff] (%p813_p3), %v163_v0  ;;  %166 = vst [vmem:[%s143_s5 + $0x8] sm:$0xff] (%p813_p3), %v165_v1  ;;  %v169_v3 = vld [vmem:[%s150_s4 + $0x28] sm:$0xff] (%p813_p3) }
  0x1d   : > { %168 = vst [vmem:[%s143_s5 + $0x10] sm:$0xff] (%p813_p3), %v167_v2  ;;  %170 = vst [vmem:[%s143_s5 + $0x18] sm:$0xff] (%p813_p3), %v169_v3 }
  0x1f PF: > { %176 = sbr.rel (!%p813_p3) target bundleno = 38 (0x26), region = 43  ;;  %s178_s6 = sand.u32 (%p813_p3), 1, %s720_s11  }
  0x20   : > { %s544_s7 = sshll.u32 (%p813_p3), %s736_s15, 3  ;;  %s543_s8 = sshll.u32 (%p813_p3), %s178_s6, 5 }
  0x21   : > { %s182_s24 = scalar_lea.vmem (%p813_p3), %s935_s1, %s544_s7  ;;  %s180_s25 = scalar_lea.vmem (%p813_p3), [#allocation8], %s543_s8 }
  0x22   : > { %v216_v4 = vld [vmem:[%s182_s24] sm:$0xff] (%p813_p3)  ;;  %v218_v5 = vld [vmem:[%s182_s24 + $0x10] sm:$0xff] (%p813_p3) }
  0x23   : > { %v220_v6 = vld [vmem:[%s182_s24 + $0x20] sm:$0xff] (%p813_p3)  ;;  %217 = vst [vmem:[%s180_s25] sm:$0xff] (%p813_p3), %v216_v4  ;;  %219 = vst [vmem:[%s180_s25 + $0x8] sm:$0xff] (%p813_p3), %v218_v5  ;;  %v222_v7 = vld [vmem:[%s182_s24 + $0x30] sm:$0xff] (%p813_p3) }
  0x24   : > { %221 = vst [vmem:[%s180_s25 + $0x10] sm:$0xff] (%p813_p3), %v220_v6  ;;  %223 = vst [vmem:[%s180_s25 + $0x18] sm:$0xff] (%p813_p3), %v222_v7 }
  0x26 PF: > { %p545_p12 = scmp.ge.s32.totalorder %s740_s16, 1  ;;  %p228_p13 = scmp.lt.s32.totalorder %s740_s16, 5 }
  0x28   : > { %p229_p0 = pnand %p545_p12, %p228_p13 }
  0x29   : > { %s235_s21 = sand.u32 (!%p229_p0), 1, %s716_s10   ;;  %p272_p1 = scmp.eq.s32.totalorder (!%p229_p0), %s724_s12, 0 }
  0x2a   : > { %232 = sbr.rel (%p229_p0) target bundleno = 414 (0x19e), region = 81  ;;  %s546_s27 = sshll.u32 (!%p229_p0), %s235_s21, 5 }
  0x2b   : > { %s237_s28 = scalar_lea.vmem (!%p229_p0), [#allocation7], %s546_s27  ;;  %s856_s29 = scalar_lea.vmem (!%p229_p0), [#allocation8], %s546_s27 }
  0x2c   : > { %s858_s30 = scalar_lea.vmem (!%p229_p0), [#allocation9], %s546_s27 }
  0x31   : > { %277 = sbr.rel (!%p272_p1) target bundleno = 56 (0x38), region = 93  ;;  %v742_v8 = vmov (%p272_p1), 0.0  }
  0x32   : > { %278 = vst [vmem:[#allocation2] sm:$0xff] (%p272_p1), %v742_v8  ;;  %279 = vst [vmem:[#allocation2 + $0x8] sm:$0xff] (%p272_p1), %v742_v8 }
  0x33   : > { %280 = vst [vmem:[#allocation3] sm:$0xff] (%p272_p1), %v742_v8  ;;  %281 = vst [vmem:[#allocation3 + $0x8] sm:$0xff] (%p272_p1), %v742_v8 }
  0x38 PF: > { %p550_p2 = scmp.ne.s32.totalorder %s724_s12, 0 }
  0x39   : > { %v285_v9 = vld [vmem:[%s237_s28] sm:$0xff] (!%p550_p2)  ;;  %v551_v10 = vld [vmem:[%s237_s28 + $0x10] sm:$0xff] (!%p550_p2)  ;;  %v286_v13 = vld [vmem:[%s237_s28 + $0x8] sm:$0xff] (!%p550_p2) }
  0x3a   : > { %284 = sbr.rel (%p550_p2) target bundleno = 66 (0x42), region = 97  ;;  %v302_v11 = vld [vmem:[#allocation2] sm:$0xff] (!%p550_p2)  ;;  %v296_v12 = vadd.f32 (!%p550_p2), %v551_v10, %v285_v9  ;;  %v552_v14 = vld [vmem:[%s237_s28 + $0x18] sm:$0xff] (!%p550_p2)  ;;  %v303_v15 = vld [vmem:[#allocation2 + $0x8] sm:$0xff] (!%p550_p2)  ;;  %v289_v16 = vmul.f32 (!%p550_p2), %v285_v9, %v285_v9  ;;  %v298_v17 = vmul.f32 (!%p550_p2), %v551_v10, %v551_v10  ;;  %321 = vst [vmem:[#allocation6] sm:$0xff] (!%p550_p2), %v285_v9  ;;  %v290_v20 = vmul.f32 (!%p550_p2), %v286_v13, %v286_v13 }
  0x3b   : > { %323 = vst [vmem:[#allocation6 + $0x10] sm:$0xff] (!%p550_p2), %v551_v10  ;;  %v297_v18 = vadd.f32 (!%p550_p2), %v552_v14, %v286_v13  ;;  %v308_v19 = vld [vmem:[#allocation3] sm:$0xff] (!%p550_p2)  ;;  %v299_v21 = vmul.f32 (!%p550_p2), %v552_v14, %v552_v14  ;;  %322 = vst [vmem:[#allocation6 + $0x8] sm:$0xff] (!%p550_p2), %v286_v13  ;;  %v309_v24 = vld [vmem:[#allocation3 + $0x8] sm:$0xff] (!%p550_p2) }
  0x3c   : > { %324 = vst [vmem:[#allocation6 + $0x18] sm:$0xff] (!%p550_p2), %v552_v14  ;;  %v304_v22 = vadd.f32 (!%p550_p2), %v302_v11, %v296_v12  ;;  %v300_v23 = vadd.f32 (!%p550_p2), %v298_v17, %v289_v16 }
  0x3d   : > { %v305_v25 = vadd.f32 (!%p550_p2), %v303_v15, %v297_v18  ;;  %v301_v26 = vadd.f32 (!%p550_p2), %v299_v21, %v290_v20 }
  0x3e   : > { %306 = vst [vmem:[#allocation2] sm:$0xff] (!%p550_p2), %v304_v22  ;;  %v310_v27 = vadd.f32 (!%p550_p2), %v308_v19, %v300_v23 }
  0x3f   : > { %307 = vst [vmem:[#allocation2 + $0x8] sm:$0xff] (!%p550_p2), %v305_v25  ;;  %v311_v28 = vadd.f32 (!%p550_p2), %v309_v24, %v301_v26 }
  0x40   : > { %312 = vst [vmem:[#allocation3] sm:$0xff] (!%p550_p2), %v310_v27 }
  0x41   : > { %313 = vst [vmem:[#allocation3 + $0x8] sm:$0xff] %v311_v28 }
  0x42 PF: > { %p325_p3 = scmp.eq.s32.totalorder %s724_s12, 1 }
  0x43   : > { %v347_v43 = vld [vmem:[%s856_s29] sm:$0xff] (%p325_p3)  ;;  %v348_v44 = vld [vmem:[%s856_s29 + $0x8] sm:$0xff] (%p325_p3)  ;;  %vm354_vm0 = vcmask (%p325_p3), 7168   ;;  %v554_v48 = vld [vmem:[%s856_s29 + $0x10] sm:$0xff] (%p325_p3) }
  0x44   : > { %329 = sbr.rel (!%p325_p3) target bundleno = 246 (0xf6), region = 101  ;;  %v555_v49 = vld [vmem:[%s856_s29 + $0x18] sm:$0xff] (%p325_p3) }
  0x46   : > { %v330_v29 = vld [vmem:[#allocation2] sm:$0xff] (%p325_p3) }
  0x47   : > { %v331_v30 = vld [vmem:[#allocation2 + $0x8] sm:$0xff] (%p325_p3) }
  0x48   : > { %v335_v31 = vld [vmem:[#allocation3] sm:$0xff] (%p325_p3)  ;;  %v332_v32 = vadd.f32 (%p325_p3), %v331_v30, %v330_v29  ;;  %v336_v33 = vld [vmem:[#allocation3 + $0x8] sm:$0xff] (%p325_p3) }
  0x49   : > { %v337_v34 = vadd.f32 (%p325_p3), %v336_v33, %v335_v31 }
  0x4a   : > { %333 = vadd.xlane.f32.xlu0 (%p325_p3), %v332_v32 }
  0x4e   : > { %338 = vadd.xlane.f32.xlu0 %v337_v34 }
  0xd7   : > { %v334_v35 = vpop.xlane.xlu0 %333 }
  0xd8   : > { %v340_v36 = vmul.f32 0.001953125, %v334_v35 }
  0xda   : > { %v342_v38 = vmul.f32 %v340_v36, %v340_v36 }
  0xdb   : > { %v339_v37 = vpop.xlane.xlu0 %338 }
  0xdc   : > { %v341_v39 = vmul.f32 0.001953125, %v339_v37 }
  0xde   : > { %v343_v40 = vsub.f32 %v341_v39, %v342_v38 }
  0xe0   : > { %v344_v41 = vmax.f32 %v343_v40, 0.0 }
  0xe2   : > { %v345_v42 = vadd.f32 1e-05, %v344_v41 }
  0xe4   : > { %642 = vrsqrt.f32 %v345_v42 }
  0xee   : > { %v643_v45 = vpop.eup %642 }
  0xef   : > { %v352_v46 = vmul.f32 %v643_v45, %v347_v43  ;;  %v353_v47 = vmul.f32 %v643_v45, %v348_v44 }
  0xf1   : > { %355 = vst.msk [vmem:[#allocation4] sm:$0xff] %vm354_vm0, %v352_v46  ;;  %356 = vst.msk [vmem:[#allocation4 + $0x8] sm:$0xff] %vm354_vm0, %v353_v47  ;;  %v357_v50 = vmul.f32 %v352_v46, %v340_v36  ;;  %v358_v51 = vmul.f32 %v353_v47, %v340_v36 }
  0xf3   : > { %v359_v52 = vsub.f32 %v554_v48, %v357_v50  ;;  %v360_v53 = vsub.f32 %v555_v49, %v358_v51 }
  0xf5   : > { %361 = vst.msk [vmem:[#allocation5] sm:$0xff] %vm354_vm0, %v359_v52  ;;  %362 = vst.msk [vmem:[#allocation5 + $0x8] sm:$0xff] %vm354_vm0, %v360_v53 }
  0xf6 PF: > { %p556_p4 = scmp.ne.s32.totalorder %s724_s12, 1 }
  0xf7   : > { %v743_v56 = vmov (!%p556_p4), 0   ;;  %v369_v59 = vld [vmem:[#allocation6] sm:$0xff] (!%p556_p4)  ;;  %v370_v60 = vld [vmem:[#allocation6 + $0x8] sm:$0xff] (!%p556_p4)  ;;  %v371_v1 = vld [vmem:[#allocation6 + $0x10] sm:$0xff] (!%p556_p4) }
  0xf8   : > { %365 = sbr.rel (%p556_p4) target bundleno = 388 (0x184), region = 105  ;;  %v373_v55 = vld [vmem:[#allocation4] sm:$0xff] (!%p556_p4)  ;;  %645 = vset.pattern.permute.xlu1 (!%p556_p4), %v743_v56  ;;  %644 = vset.pattern.permute.xlu0 (!%p556_p4), %v743_v56  ;;  %v374_v58 = vld [vmem:[#allocation4 + $0x8] sm:$0xff] (!%p556_p4)  ;;  %v372_v2 = vld [vmem:[#allocation6 + $0x18] sm:$0xff] (!%p556_p4) }
  0xf9   : > { %377 = vperm.xlu0 (!%p556_p4), %644, %v373_v55  }
  0xfc   : > { %v389_v54 = vld [vmem:[#allocation5] sm:$0xff] (!%p556_p4)  ;;  %v390_v57 = vld [vmem:[#allocation5 + $0x8] sm:$0xff] (!%p556_p4) }
  0xfd   : > { %393 = vperm.xlu1 (!%p556_p4), %645, %v389_v54   ;;  %382 = vperm.xlu0 (!%p556_p4), %644, %v374_v58  }
 0x101   : > { %398 = vperm.xlu1 %645, %v390_v57  }
 0x178   : > { %v378_v62 = vpop.permute.xlu0 %377 }
 0x179   : > { %v385_v63 = vmul.f32 %v378_v62, %v369_v59  ;;  %v386_v0 = vmul.f32 %v378_v62, %v370_v60 }
 0x17c   : > { %v394_v61 = vpop.permute.xlu1 %393  ;;  %v383_v5 = vpop.permute.xlu0 %382 }
 0x17d   : > { %v401_v3 = vadd.f32 %v394_v61, %v385_v63  ;;  %v402_v4 = vadd.f32 %v394_v61, %v386_v0  ;;  %v387_v6 = vmul.f32 %v383_v5, %v371_v1  ;;  %v388_v7 = vmul.f32 %v383_v5, %v372_v2 }
 0x17f   : > { %405 = vst [vmem:[%s858_s30] sm:$0xff] %v401_v3  ;;  %406 = vst [vmem:[%s858_s30 + $0x8] sm:$0xff] %v402_v4 }
 0x180   : > { %v399_v8 = vpop.permute.xlu1 %398 }
 0x181   : > { %v403_v9 = vadd.f32 %v399_v8, %v387_v6  ;;  %v404_v10 = vadd.f32 %v399_v8, %v388_v7 }
 0x183   : > { %407 = vst [vmem:[%s858_s30 + $0x10] sm:$0xff] %v403_v9  ;;  %408 = vst [vmem:[%s858_s30 + $0x18] sm:$0xff] %v404_v10 }
 0x184 PF: > { %s565_s12 = sshll.u32 %s728_s13, 8  ;;  %s426_s6 = sshll.u32 %s858_s30, 4  ;;  %s878_s6 = int_to_ptr.vmem [resolvable:$true] %s426_s6 }
 0x185   : > { %s875_s5 = scalar_lea.hbm %s936_s2, %s565_s12  ;;  %s882_s7 = scalar_lea.sflag [#allocation10], %s235_s21 }
 0x186   : > { %s646_s8 = scalar_lea.vmem %s878_s6, 512  ;;  %s744_s13 = smov [#allocation9]  }
 0x187   : > { %p647_p5 = scmp.ne.s32.totalorder %s878_s6, %s646_s8  ;;  %s650_s17 = sshll.u32 %s744_s13, 4  ;;  %s651_s17 = int_to_ptr.vmem [resolvable:$false] %s650_s17 }
 0x188   : > { %s652_s18 = scalar_lea.vmem %s651_s17, 1024  ;;  %p653_p10 = scmp.lt.s32.totalorder %s878_s6, %s651_s17 }
 0x189   : > { %p648_p6 = pnand %p647_p5, %p819_p7  ;;  %p654_p11 = scmp.lt.s32.totalorder %s652_s18, %s646_s8 }
 0x18b   : > { %p649_p8 = pneg %p648_p6  ;;  %p655_p12 = por %p654_p11, %p653_p10 }
 0x18d   : > { %p656_p13 = pnand %p655_p12, %p649_p8 }
 0x18f   : > { %659 = shalt.err (!%p656_p13)
}
 0x190   : > { %s660_s24 = scalar_lea.hbm %s875_s5, 512  ;;  %s664_s27 = scalar_lea.hbm %s936_s2, 1024 }
 0x191   : > { %p661_p0 = scmp.ne.s32.totalorder %s875_s5, %s660_s24  ;;  %p665_p3 = scmp.lt.u32.totalorder %s875_s5, %s936_s2 }
 0x192   : > { %p666_p4 = scmp.lt.u32.totalorder %s664_s27, %s660_s24  ;;  %p668_p6 = scmp.lt.u32.totalorder %s660_s24, %s875_s5 }
 0x193   : > { %p662_p1 = pnand %p661_p0, %p819_p7 }
 0x194   : > { %p667_p5 = por %p666_p4, %p665_p3 }
 0x195   : > { %p663_p2 = pneg %p662_p1 }
 0x196   : > { %p669_p8 = por %p668_p6, %p667_p5 }
 0x198   : > { %p670_p10 = pnand %p669_p8, %p663_p2 }
 0x19a   : > { %673 = shalt.err (!%p670_p10)
}
 0x19b   : > { %s745_s30 = smov 256   ;;  %s746_s12 = smov 512  }
 0x19c   : > { %s747_s3 = smov 16  }
 0x19d   : > { %566 = dma.vmem_to_hbm [thread:$0]  (%p819_p7), %s878_s6, 512, %s875_s5, %s882_s7, %s745_s30, %s746_s12, %s747_s3  }
 0x19e PF: > { %p572_p11 = scmp.ge.s32.totalorder %s740_s16, 2  ;;  %s441_s4 = sand.u32 1, %s712_s9  }
 0x19f   : > { %s442_s8 = scalar_lea.sflag [#allocation10], %s441_s4 }
 0x1a0   : > { %p569_p12 = pnand %p572_p11, %p825_p9 }
 0x1a2   : > { %707 = dma.done.wait (!%p569_p12), %s442_s8, 512  }
 0x1a3   : > { %709 = vsyncadd (!%p569_p12), %s442_s8, 4294966784  ;;  %s15_s16 = sadd.s32 1, %s740_s16   ;;  %s940_s9 = smov %s716_s10 }
 0x1a4   : > { %p12_p13 = scmp.ge.s32.totalorder %s15_s16, 6   ;;  %s941_s10 = smov %s720_s11 }
 0x1a5   : > { %s942_s11 = smov %s833_s26  ;;  %s943_s12 = smov %s732_s14 }
 0x1a6   : > { %s944_s13 = smov %s736_s15  ;;  %s945_s14 = smov %s948_s19 }
 0x1a7   : > { %s946_s15 = smov %s952_s20  ;;  %14 = sbr.rel (!%p12_p13) target bundleno = 5 (0x5), region = 157 }
 0x1ae   :  { %447 = vsyncpa [#allocation10], 1 }
 0x1af   :  { %449 = vsyncpa [#allocation10 + $0x1], 1 }

</bundles_post_ra>
